<compile_context>
chip_gen: v5e
topology: v5e:2x2
jax: 0.10.0
libtpu: 0.0.40
codegen_flags: <defaults>
</compile_context>

<pallas_src>
import functools

import jax
import jax.numpy as jnp
import numpy as np
from jax.experimental import pallas as pl
from jax.experimental.pallas import tpu as pltpu

_K1D = (0.05, 0.25, 0.4, 0.25, 0.05)   # gaussian taps from EdgeLoss.__init__
_EPS = 1e-4                            # CharbonnierLoss eps


def _gauss_op(n):
    """(n, n) banded matrix: 1-D 5-tap gaussian with replicate padding folded in."""
    g = np.zeros((n, n), np.float64)
    for v in range(n):
        for d, kd in enumerate(_K1D):
            h = min(max(v + d - 2, 0), n - 1)
            g[v, h] += kd
    return g


def _pool_op(n):
    """(n, 2n): AvgPool1d(kernel=2, stride=2) along one axis."""
    p = np.zeros((n, 2 * n), np.float64)
    for v in range(n):
        p[v, 2 * v] = 0.5
        p[v, 2 * v + 1] = 0.5
    return p


def _lap_op(n):
    """(n, n): one axis of blur(mask4*blur(.)) fully folded: G @ diag(2*[i even]) @ G."""
    g = _gauss_op(n)
    d2 = np.zeros(n, np.float64)
    d2[0::2] = 2.0
    return (g * d2[None, :]) @ g


def _edge_loss_kernel(x2_ref, y_ref, ph_ref, pwt_ref, ah_ref, awt_ref, out_ref,
                      *, H, W, tb, bc):
    f32 = jnp.float32
    eps2 = f32(_EPS * _EPS)

    # x branch, W direction: one flattened MXU matmul for the whole tile.
    # (tb*2H, 2W) bf16 @ (2W, W) bf16 -> (tb*2H, W) f32
    s1 = jnp.dot(x2_ref[...], pwt_ref[...], preferred_element_type=f32)

    ph = ph_ref[...]          # (H, 2H)  bf16 — pool along H
    ah = ah_ref[...]          # (H, H)   bf16 — folded laplacian, H side
    awt = awt_ref[...]        # (W, W)   bf16 — folded laplacian, W side (transposed)

    base = pl.program_id(0) * tb
    total = jnp.zeros((), f32)
    for i in range(tb):       # static unroll; tb is small (<= 16)
        # pool along H: (H, 2H) @ (2H, W) -> (H, W)
        xp = jnp.dot(ph, s1[2 * H * i:2 * H * (i + 1), :].astype(jnp.bfloat16),
                     preferred_element_type=f32)
        # laplacian is linear: lap(xp) - lap(y) = lap(xp - y) = z - A_H z A_W^T
        z = xp - y_ref[H * i:H * (i + 1), :]
        t = jnp.dot(ah, z.astype(jnp.bfloat16), preferred_element_type=f32)
        blur = jnp.dot(t.astype(jnp.bfloat16), awt, preferred_element_type=f32)
        d = z - blur
        part = jnp.sum(jnp.sqrt(d * d + eps2))
        # mask out zero-padded slabs (B*C was padded up to a multiple of tb)
        total = total + jnp.where(base + i < bc, part, f32(0.0))

    # lane-dense (8,128) block, pre-scaled so the wrapper epilogue is jnp.sum(out)
    out_ref[...] = jnp.broadcast_to(total * f32(1.0 / (8 * 128)), out_ref.shape)


def edge_loss(x, y):
    """EdgeLoss.forward.  x: (B, C, 2H, 2W), y: (B, C, H, W), NCHW."""
    B, C, H2, W2 = x.shape
    By, Cy, H, W = y.shape
    assert (B, C) == (By, Cy)
    # TODO(synk): AvgPool2d(2,2,ceil_mode=True) for odd spatial sizes is not handled.
    assert H2 == 2 * H and W2 == 2 * W
    assert H % 8 == 0  # sublane-aligned per-image slabs

    BC = B * C

    # Tile size: bound per-step input VMEM, keep >= 2 grid steps (v7x has 2 TCs
    # sharded over the "parallel" axis), pad B*C up to a multiple of tb.
    slab_bytes = (4 * H * W) * 2 + (H * W) * 4     # bf16 x2 slab + f32 y slab
    budget = 8 * 1024 * 1024                       # per-step inputs (double-buffered)
    tb = int(max(1, min(BC, budget // slab_bytes, 16)))
    if BC >= 2:
        tb = min(tb, (BC + 1) // 2)                # >= 2 parallel grid steps
    n_tiles = -(-BC // tb)
    BC_pad = n_tiles * tb

    # Reshape-only layout: W stays the minor (lane) dim; pooling happens in-kernel.
    x2 = x.astype(jnp.bfloat16).reshape(BC * H2, W2)
    yf = y.astype(jnp.float32).reshape(BC * H, W)
    if BC_pad != BC:
        x2 = jnp.pad(x2, ((0, (BC_pad - BC) * H2), (0, 0)))
        yf = jnp.pad(yf, ((0, (BC_pad - BC) * H), (0, 0)))

    # Folded stencil operators (float64 numpy -> bf16 MXU weights).
    ph = jnp.asarray(_pool_op(H), jnp.bfloat16)                            # (H, 2H)
    pwt = jnp.asarray(np.ascontiguousarray(_pool_op(W).T), jnp.bfloat16)   # (2W, W)
    ah = jnp.asarray(_lap_op(H), jnp.bfloat16)                             # (H, H)
    awt = jnp.asarray(np.ascontiguousarray(_lap_op(W).T), jnp.bfloat16)    # (W, W)

    out = pl.pallas_call(
        functools.partial(_edge_loss_kernel, H=H, W=W, tb=tb, bc=BC),
        out_shape=jax.ShapeDtypeStruct((n_tiles * 8, 128), jnp.float32),
        grid=(n_tiles,),
        in_specs=[
            # NOTE: if profiling on v5e/v6e shows exposed x2 DMA, add
            # pipeline_mode=pl.Buffered(3) to this spec (keep 2 on v7x).
            pl.BlockSpec((tb * H2, W2), lambda i: (i, 0)),
            pl.BlockSpec((tb * H, W), lambda i: (i, 0)),
            pl.BlockSpec((H, H2), lambda i: (0, 0)),
            pl.BlockSpec((W2, W), lambda i: (0, 0)),
            pl.BlockSpec((H, H), lambda i: (0, 0)),
            pl.BlockSpec((W, W), lambda i: (0, 0)),
        ],
        out_specs=pl.BlockSpec((8, 128), lambda i: (i, 0)),
        compiler_params=pltpu.CompilerParams(
            dimension_semantics=("parallel",),
            # <= 48 MiB is safe on v7x (64 MiB physical); v5e/v6e (128 MiB)
            # could raise this together with tb for even larger tiles.
            vmem_limit_bytes=48 * 1024 * 1024),
    )(x2, yf, ph, pwt, ah, awt)

    # Each (8,128) block holds its tile's partial / 1024; padded slabs were
    # masked in-kernel, so the divisor is the true element count.
    return jnp.sum(out) / jnp.float32(BC * H * W)


# ---------------- pure-JAX reference (for correctness check only) -----------
def _edge_loss_ref(x, y):
    k1 = jnp.array(_K1D, jnp.float32)
    kk = jnp.outer(k1, k1)

    def conv_gauss(img):  # NCHW
        C = img.shape[1]
        imgp = jnp.pad(img, ((0, 0), (0, 0), (2, 2), (2, 2)), mode="edge")
        w = jnp.broadcast_to(kk, (C, 1, 5, 5))
        return jax.lax.conv_general_dilated(
            imgp, w, (1, 1), "VALID", feature_group_count=C,
            dimension_numbers=("NCHW", "OIHW", "NCHW"),
            precision=jax.lax.Precision.HIGHEST)

    def lap(cur):
        f = conv_gauss(cur)
        down = f[:, :, ::2, ::2]
        nf = jnp.zeros_like(f).at[:, :, ::2, ::2].set(down * 4.0)
        return cur - conv_gauss(nf)

    B, C, H2, W2 = x.shape
    xp = x.astype(jnp.float32).reshape(B, C, H2 // 2, 2, W2 // 2, 2).mean(axis=(3, 5))
    d = lap(xp) - lap(y.astype(jnp.float32))
    return jnp.mean(jnp.sqrt(d * d + _EPS * _EPS))


if __name__ == "__main__":
    key = jax.random.PRNGKey(0)
    kx, ky = jax.random.split(key)
    # EdgeLoss's grouped gaussian conv is built for 5 channels; x is at 2x the
    # spatial resolution of y so that AvgPool2d(2,2) matches the shapes.
    x = jax.random.normal(kx, (2, 5, 32, 32), dtype=jnp.float32)
    y = jax.random.normal(ky, (2, 5, 16, 16), dtype=jnp.float32)

    loss = jax.block_until_ready(jax.jit(edge_loss)(x, y))
    ref = jax.block_until_ready(_edge_loss_ref(x, y))
    # bf16 MXU operands trade ~1e-3 relative accuracy for ~6x matmul throughput.
    assert jnp.allclose(loss, ref, rtol=5e-3, atol=5e-4), (loss, ref)
    print("KERNEL_OK")
</pallas_src>

<mosaic_0001>
module attributes {stable_mosaic.version = 11 : i64} {
  func.func @_edge_loss_kernel(%arg0: i32, %arg1: memref<160x32xbf16, #tpu.memory_space<vmem>>, %arg2: memref<80x16xf32, #tpu.memory_space<vmem>>, %arg3: memref<16x32xbf16, #tpu.memory_space<vmem>>, %arg4: memref<32x16xbf16, #tpu.memory_space<vmem>>, %arg5: memref<16x16xbf16, #tpu.memory_space<vmem>>, %arg6: memref<16x16xbf16, #tpu.memory_space<vmem>>, %arg7: memref<8x128xf32, #tpu.memory_space<vmem>>) attributes {dimension_semantics = [#tpu.dimension_semantics<parallel>], iteration_bounds = array<i64: 2>, scalar_prefetch = 0 : i64, scratch_operands = 0 : i64, tpu.core_type = #tpu.core_type<tc>, window_params = [{transform_indices = @transform_0, window_bounds = array<i64: 160, 32>}, {transform_indices = @transform_1, window_bounds = array<i64: 80, 16>}, {pipeline_mode = #tpu.pipeline_mode<synchronous>, transform_indices = @transform_2, window_bounds = array<i64: 16, 32>}, {pipeline_mode = #tpu.pipeline_mode<synchronous>, transform_indices = @transform_3, window_bounds = array<i64: 32, 16>}, {pipeline_mode = #tpu.pipeline_mode<synchronous>, transform_indices = @transform_4, window_bounds = array<i64: 16, 16>}, {pipeline_mode = #tpu.pipeline_mode<synchronous>, transform_indices = @transform_5, window_bounds = array<i64: 16, 16>}, {transform_indices = @transform_6, window_bounds = array<i64: 8, 128>}]} {
    %c0 = arith.constant 0 : index
    %c0_0 = arith.constant 0 : index
    %0 = vector.load %arg1[%c0, %c0_0] : memref<160x32xbf16, #tpu.memory_space<vmem>>, vector<160x32xbf16>
    %c0_1 = arith.constant 0 : index
    %c0_2 = arith.constant 0 : index
    %1 = vector.load %arg4[%c0_1, %c0_2] : memref<32x16xbf16, #tpu.memory_space<vmem>>, vector<32x16xbf16>
    %cst = arith.constant dense<0.000000e+00> : vector<160x16xf32>
    %2 = tpu.matmul %0, %1, %cst {dimension_numbers = #tpu.dot_dimension_numbers<[1], [0], [0], [1], [0, 0, 1, 1], [], []>} : vector<160x32xbf16>, vector<32x16xbf16>, vector<160x16xf32> -> vector<160x16xf32>
    %c0_3 = arith.constant 0 : index
    %c0_4 = arith.constant 0 : index
    %3 = vector.load %arg3[%c0_3, %c0_4] : memref<16x32xbf16, #tpu.memory_space<vmem>>, vector<16x32xbf16>
    %c0_5 = arith.constant 0 : index
    %c0_6 = arith.constant 0 : index
    %4 = vector.load %arg5[%c0_5, %c0_6] : memref<16x16xbf16, #tpu.memory_space<vmem>>, vector<16x16xbf16>
    %c0_7 = arith.constant 0 : index
    %c0_8 = arith.constant 0 : index
    %5 = vector.load %arg6[%c0_7, %c0_8] : memref<16x16xbf16, #tpu.memory_space<vmem>>, vector<16x16xbf16>
    %c5_i32 = arith.constant 5 : i32
    %6 = arith.muli %arg0, %c5_i32 : i32
    %7 = vector.extract_strided_slice %2 {offsets = [0, 0], sizes = [32, 16], strides = [1, 1]} : vector<160x16xf32> to vector<32x16xf32>
    %8 = arith.truncf %7 : vector<32x16xf32> to vector<32x16xbf16>
    %cst_9 = arith.constant dense<0.000000e+00> : vector<16x16xf32>
    %9 = tpu.matmul %3, %8, %cst_9 {dimension_numbers = #tpu.dot_dimension_numbers<[1], [0], [0], [1], [0, 0, 1, 1], [], []>} : vector<16x32xbf16>, vector<32x16xbf16>, vector<16x16xf32> -> vector<16x16xf32>
    %c0_10 = arith.constant 0 : index
    %c0_11 = arith.constant 0 : index
    %10 = vector.load %arg2[%c0_10, %c0_11] : memref<80x16xf32, #tpu.memory_space<vmem>>, vector<16x16xf32>
    %11 = arith.subf %9, %10 : vector<16x16xf32>
    %12 = arith.truncf %11 : vector<16x16xf32> to vector<16x16xbf16>
    %cst_12 = arith.constant dense<0.000000e+00> : vector<16x16xf32>
    %13 = tpu.matmul %4, %12, %cst_12 {dimension_numbers = #tpu.dot_dimension_numbers<[1], [0], [0], [1], [0, 0, 1, 1], [], []>} : vector<16x16xbf16>, vector<16x16xbf16>, vector<16x16xf32> -> vector<16x16xf32>
    %14 = arith.truncf %13 : vector<16x16xf32> to vector<16x16xbf16>
    %cst_13 = arith.constant dense<0.000000e+00> : vector<16x16xf32>
    %15 = tpu.matmul %14, %5, %cst_13 {dimension_numbers = #tpu.dot_dimension_numbers<[1], [0], [0], [1], [0, 0, 1, 1], [], []>} : vector<16x16xbf16>, vector<16x16xbf16>, vector<16x16xf32> -> vector<16x16xf32>
    %16 = arith.subf %11, %15 : vector<16x16xf32>
    %17 = arith.mulf %16, %16 : vector<16x16xf32>
    %cst_14 = arith.constant 9.99999993E-9 : f32
    %18 = vector.broadcast %cst_14 : f32 to vector<16x16xf32>
    %19 = arith.addf %17, %18 : vector<16x16xf32>
    %20 = math.sqrt %19 : vector<16x16xf32>
    %21 = vector.shape_cast %20 : vector<16x16xf32> to vector<1x16x16xf32>
    %cst_15 = arith.constant dense<0.000000e+00> : vector<1xf32>
    %22 = vector.multi_reduction <add>, %21, %cst_15 [1, 2] : vector<1x16x16xf32> to vector<1xf32>
    %23 = vector.shape_cast %22 : vector<1xf32> to vector<1x1x1xf32>
    %24 = vector.extract %23[0, 0, 0] : f32 from vector<1x1x1xf32>
    %c0_i32 = arith.constant 0 : i32
    %25 = arith.addi %6, %c0_i32 : i32
    %c10_i32 = arith.constant 10 : i32
    %26 = arith.cmpi slt, %25, %c10_i32 : i32
    %cst_16 = arith.constant 0.000000e+00 : f32
    %27 = arith.select %26, %24, %cst_16 : f32
    %cst_17 = arith.constant 0.000000e+00 : f32
    %28 = arith.addf %cst_17, %27 : f32
    %29 = vector.extract_strided_slice %2 {offsets = [32, 0], sizes = [32, 16], strides = [1, 1]} : vector<160x16xf32> to vector<32x16xf32>
    %30 = arith.truncf %29 : vector<32x16xf32> to vector<32x16xbf16>
    %cst_18 = arith.constant dense<0.000000e+00> : vector<16x16xf32>
    %31 = tpu.matmul %3, %30, %cst_18 {dimension_numbers = #tpu.dot_dimension_numbers<[1], [0], [0], [1], [0, 0, 1, 1], [], []>} : vector<16x32xbf16>, vector<32x16xbf16>, vector<16x16xf32> -> vector<16x16xf32>
    %c16 = arith.constant 16 : index
    %c0_19 = arith.constant 0 : index
    %32 = vector.load %arg2[%c16, %c0_19] : memref<80x16xf32, #tpu.memory_space<vmem>>, vector<16x16xf32>
    %33 = arith.subf %31, %32 : vector<16x16xf32>
    %34 = arith.truncf %33 : vector<16x16xf32> to vector<16x16xbf16>
    %cst_20 = arith.constant dense<0.000000e+00> : vector<16x16xf32>
    %35 = tpu.matmul %4, %34, %cst_20 {dimension_numbers = #tpu.dot_dimension_numbers<[1], [0], [0], [1], [0, 0, 1, 1], [], []>} : vector<16x16xbf16>, vector<16x16xbf16>, vector<16x16xf32> -> vector<16x16xf32>
    %36 = arith.truncf %35 : vector<16x16xf32> to vector<16x16xbf16>
    %cst_21 = arith.constant dense<0.000000e+00> : vector<16x16xf32>
    %37 = tpu.matmul %36, %5, %cst_21 {dimension_numbers = #tpu.dot_dimension_numbers<[1], [0], [0], [1], [0, 0, 1, 1], [], []>} : vector<16x16xbf16>, vector<16x16xbf16>, vector<16x16xf32> -> vector<16x16xf32>
    %38 = arith.subf %33, %37 : vector<16x16xf32>
    %39 = arith.mulf %38, %38 : vector<16x16xf32>
    %cst_22 = arith.constant 9.99999993E-9 : f32
    %40 = vector.broadcast %cst_22 : f32 to vector<16x16xf32>
    %41 = arith.addf %39, %40 : vector<16x16xf32>
    %42 = math.sqrt %41 : vector<16x16xf32>
    %43 = vector.shape_cast %42 : vector<16x16xf32> to vector<1x16x16xf32>
    %cst_23 = arith.constant dense<0.000000e+00> : vector<1xf32>
    %44 = vector.multi_reduction <add>, %43, %cst_23 [1, 2] : vector<1x16x16xf32> to vector<1xf32>
    %45 = vector.shape_cast %44 : vector<1xf32> to vector<1x1x1xf32>
    %46 = vector.extract %45[0, 0, 0] : f32 from vector<1x1x1xf32>
    %c1_i32 = arith.constant 1 : i32
    %47 = arith.addi %6, %c1_i32 : i32
    %c10_i32_24 = arith.constant 10 : i32
    %48 = arith.cmpi slt, %47, %c10_i32_24 : i32
    %cst_25 = arith.constant 0.000000e+00 : f32
    %49 = arith.select %48, %46, %cst_25 : f32
    %50 = arith.addf %28, %49 : f32
    %51 = vector.extract_strided_slice %2 {offsets = [64, 0], sizes = [32, 16], strides = [1, 1]} : vector<160x16xf32> to vector<32x16xf32>
    %52 = arith.truncf %51 : vector<32x16xf32> to vector<32x16xbf16>
    %cst_26 = arith.constant dense<0.000000e+00> : vector<16x16xf32>
    %53 = tpu.matmul %3, %52, %cst_26 {dimension_numbers = #tpu.dot_dimension_numbers<[1], [0], [0], [1], [0, 0, 1, 1], [], []>} : vector<16x32xbf16>, vector<32x16xbf16>, vector<16x16xf32> -> vector<16x16xf32>
    %c32 = arith.constant 32 : index
    %c0_27 = arith.constant 0 : index
    %54 = vector.load %arg2[%c32, %c0_27] : memref<80x16xf32, #tpu.memory_space<vmem>>, vector<16x16xf32>
    %55 = arith.subf %53, %54 : vector<16x16xf32>
    %56 = arith.truncf %55 : vector<16x16xf32> to vector<16x16xbf16>
    %cst_28 = arith.constant dense<0.000000e+00> : vector<16x16xf32>
    %57 = tpu.matmul %4, %56, %cst_28 {dimension_numbers = #tpu.dot_dimension_numbers<[1], [0], [0], [1], [0, 0, 1, 1], [], []>} : vector<16x16xbf16>, vector<16x16xbf16>, vector<16x16xf32> -> vector<16x16xf32>
    %58 = arith.truncf %57 : vector<16x16xf32> to vector<16x16xbf16>
    %cst_29 = arith.constant dense<0.000000e+00> : vector<16x16xf32>
    %59 = tpu.matmul %58, %5, %cst_29 {dimension_numbers = #tpu.dot_dimension_numbers<[1], [0], [0], [1], [0, 0, 1, 1], [], []>} : vector<16x16xbf16>, vector<16x16xbf16>, vector<16x16xf32> -> vector<16x16xf32>
    %60 = arith.subf %55, %59 : vector<16x16xf32>
    %61 = arith.mulf %60, %60 : vector<16x16xf32>
    %cst_30 = arith.constant 9.99999993E-9 : f32
    %62 = vector.broadcast %cst_30 : f32 to vector<16x16xf32>
    %63 = arith.addf %61, %62 : vector<16x16xf32>
    %64 = math.sqrt %63 : vector<16x16xf32>
    %65 = vector.shape_cast %64 : vector<16x16xf32> to vector<1x16x16xf32>
    %cst_31 = arith.constant dense<0.000000e+00> : vector<1xf32>
    %66 = vector.multi_reduction <add>, %65, %cst_31 [1, 2] : vector<1x16x16xf32> to vector<1xf32>
    %67 = vector.shape_cast %66 : vector<1xf32> to vector<1x1x1xf32>
    %68 = vector.extract %67[0, 0, 0] : f32 from vector<1x1x1xf32>
    %c2_i32 = arith.constant 2 : i32
    %69 = arith.addi %6, %c2_i32 : i32
    %c10_i32_32 = arith.constant 10 : i32
    %70 = arith.cmpi slt, %69, %c10_i32_32 : i32
    %cst_33 = arith.constant 0.000000e+00 : f32
    %71 = arith.select %70, %68, %cst_33 : f32
    %72 = arith.addf %50, %71 : f32
    %73 = vector.extract_strided_slice %2 {offsets = [96, 0], sizes = [32, 16], strides = [1, 1]} : vector<160x16xf32> to vector<32x16xf32>
    %74 = arith.truncf %73 : vector<32x16xf32> to vector<32x16xbf16>
    %cst_34 = arith.constant dense<0.000000e+00> : vector<16x16xf32>
    %75 = tpu.matmul %3, %74, %cst_34 {dimension_numbers = #tpu.dot_dimension_numbers<[1], [0], [0], [1], [0, 0, 1, 1], [], []>} : vector<16x32xbf16>, vector<32x16xbf16>, vector<16x16xf32> -> vector<16x16xf32>
    %c48 = arith.constant 48 : index
    %c0_35 = arith.constant 0 : index
    %76 = vector.load %arg2[%c48, %c0_35] : memref<80x16xf32, #tpu.memory_space<vmem>>, vector<16x16xf32>
    %77 = arith.subf %75, %76 : vector<16x16xf32>
    %78 = arith.truncf %77 : vector<16x16xf32> to vector<16x16xbf16>
    %cst_36 = arith.constant dense<0.000000e+00> : vector<16x16xf32>
    %79 = tpu.matmul %4, %78, %cst_36 {dimension_numbers = #tpu.dot_dimension_numbers<[1], [0], [0], [1], [0, 0, 1, 1], [], []>} : vector<16x16xbf16>, vector<16x16xbf16>, vector<16x16xf32> -> vector<16x16xf32>
    %80 = arith.truncf %79 : vector<16x16xf32> to vector<16x16xbf16>
    %cst_37 = arith.constant dense<0.000000e+00> : vector<16x16xf32>
    %81 = tpu.matmul %80, %5, %cst_37 {dimension_numbers = #tpu.dot_dimension_numbers<[1], [0], [0], [1], [0, 0, 1, 1], [], []>} : vector<16x16xbf16>, vector<16x16xbf16>, vector<16x16xf32> -> vector<16x16xf32>
    %82 = arith.subf %77, %81 : vector<16x16xf32>
    %83 = arith.mulf %82, %82 : vector<16x16xf32>
    %cst_38 = arith.constant 9.99999993E-9 : f32
    %84 = vector.broadcast %cst_38 : f32 to vector<16x16xf32>
    %85 = arith.addf %83, %84 : vector<16x16xf32>
    %86 = math.sqrt %85 : vector<16x16xf32>
    %87 = vector.shape_cast %86 : vector<16x16xf32> to vector<1x16x16xf32>
    %cst_39 = arith.constant dense<0.000000e+00> : vector<1xf32>
    %88 = vector.multi_reduction <add>, %87, %cst_39 [1, 2] : vector<1x16x16xf32> to vector<1xf32>
    %89 = vector.shape_cast %88 : vector<1xf32> to vector<1x1x1xf32>
    %90 = vector.extract %89[0, 0, 0] : f32 from vector<1x1x1xf32>
    %c3_i32 = arith.constant 3 : i32
    %91 = arith.addi %6, %c3_i32 : i32
    %c10_i32_40 = arith.constant 10 : i32
    %92 = arith.cmpi slt, %91, %c10_i32_40 : i32
    %cst_41 = arith.constant 0.000000e+00 : f32
    %93 = arith.select %92, %90, %cst_41 : f32
    %94 = arith.addf %72, %93 : f32
    %95 = vector.extract_strided_slice %2 {offsets = [128, 0], sizes = [32, 16], strides = [1, 1]} : vector<160x16xf32> to vector<32x16xf32>
    %96 = arith.truncf %95 : vector<32x16xf32> to vector<32x16xbf16>
    %cst_42 = arith.constant dense<0.000000e+00> : vector<16x16xf32>
    %97 = tpu.matmul %3, %96, %cst_42 {dimension_numbers = #tpu.dot_dimension_numbers<[1], [0], [0], [1], [0, 0, 1, 1], [], []>} : vector<16x32xbf16>, vector<32x16xbf16>, vector<16x16xf32> -> vector<16x16xf32>
    %c64 = arith.constant 64 : index
    %c0_43 = arith.constant 0 : index
    %98 = vector.load %arg2[%c64, %c0_43] : memref<80x16xf32, #tpu.memory_space<vmem>>, vector<16x16xf32>
    %99 = arith.subf %97, %98 : vector<16x16xf32>
    %100 = arith.truncf %99 : vector<16x16xf32> to vector<16x16xbf16>
    %cst_44 = arith.constant dense<0.000000e+00> : vector<16x16xf32>
    %101 = tpu.matmul %4, %100, %cst_44 {dimension_numbers = #tpu.dot_dimension_numbers<[1], [0], [0], [1], [0, 0, 1, 1], [], []>} : vector<16x16xbf16>, vector<16x16xbf16>, vector<16x16xf32> -> vector<16x16xf32>
    %102 = arith.truncf %101 : vector<16x16xf32> to vector<16x16xbf16>
    %cst_45 = arith.constant dense<0.000000e+00> : vector<16x16xf32>
    %103 = tpu.matmul %102, %5, %cst_45 {dimension_numbers = #tpu.dot_dimension_numbers<[1], [0], [0], [1], [0, 0, 1, 1], [], []>} : vector<16x16xbf16>, vector<16x16xbf16>, vector<16x16xf32> -> vector<16x16xf32>
    %104 = arith.subf %99, %103 : vector<16x16xf32>
    %105 = arith.mulf %104, %104 : vector<16x16xf32>
    %cst_46 = arith.constant 9.99999993E-9 : f32
    %106 = vector.broadcast %cst_46 : f32 to vector<16x16xf32>
    %107 = arith.addf %105, %106 : vector<16x16xf32>
    %108 = math.sqrt %107 : vector<16x16xf32>
    %109 = vector.shape_cast %108 : vector<16x16xf32> to vector<1x16x16xf32>
    %cst_47 = arith.constant dense<0.000000e+00> : vector<1xf32>
    %110 = vector.multi_reduction <add>, %109, %cst_47 [1, 2] : vector<1x16x16xf32> to vector<1xf32>
    %111 = vector.shape_cast %110 : vector<1xf32> to vector<1x1x1xf32>
    %112 = vector.extract %111[0, 0, 0] : f32 from vector<1x1x1xf32>
    %c4_i32 = arith.constant 4 : i32
    %113 = arith.addi %6, %c4_i32 : i32
    %c10_i32_48 = arith.constant 10 : i32
    %114 = arith.cmpi slt, %113, %c10_i32_48 : i32
    %cst_49 = arith.constant 0.000000e+00 : f32
    %115 = arith.select %114, %112, %cst_49 : f32
    %116 = arith.addf %94, %115 : f32
    %cst_50 = arith.constant 9.765625E-4 : f32
    %117 = arith.mulf %116, %cst_50 : f32
    %118 = vector.broadcast %117 : f32 to vector<8x128xf32>
    %c0_51 = arith.constant 0 : index
    %c0_52 = arith.constant 0 : index
    %119 = vector.load %arg7[%c0_51, %c0_52] : memref<8x128xf32, #tpu.memory_space<vmem>>, vector<8x128xf32>
    tpu.vector_store %arg7[%c0_51, %c0_52], %118 {strides = array<i32>} : memref<8x128xf32, #tpu.memory_space<vmem>>, vector<8x128xf32>,
    return
  }
  func.func @transform_0(%arg0: i32) -> (i32, i32) {
    %c0_i32 = arith.constant 0 : i32
    %c0_i32_0 = arith.constant 0 : i32
    return %arg0, %c0_i32 : i32, i32
  }
  func.func @transform_1(%arg0: i32) -> (i32, i32) {
    %c0_i32 = arith.constant 0 : i32
    %c0_i32_0 = arith.constant 0 : i32
    return %arg0, %c0_i32 : i32, i32
  }
  func.func @transform_2(%arg0: i32) -> (i32, i32) {
    %c0_i32 = arith.constant 0 : i32
    %c0_i32_0 = arith.constant 0 : i32
    %c0_i32_1 = arith.constant 0 : i32
    return %c0_i32, %c0_i32_0 : i32, i32
  }
  func.func @transform_3(%arg0: i32) -> (i32, i32) {
    %c0_i32 = arith.constant 0 : i32
    %c0_i32_0 = arith.constant 0 : i32
    %c0_i32_1 = arith.constant 0 : i32
    return %c0_i32, %c0_i32_0 : i32, i32
  }
  func.func @transform_4(%arg0: i32) -> (i32, i32) {
    %c0_i32 = arith.constant 0 : i32
    %c0_i32_0 = arith.constant 0 : i32
    %c0_i32_1 = arith.constant 0 : i32
    return %c0_i32, %c0_i32_0 : i32, i32
  }
  func.func @transform_5(%arg0: i32) -> (i32, i32) {
    %c0_i32 = arith.constant 0 : i32
    %c0_i32_0 = arith.constant 0 : i32
    %c0_i32_1 = arith.constant 0 : i32
    return %c0_i32, %c0_i32_0 : i32, i32
  }
  func.func @transform_6(%arg0: i32) -> (i32, i32) {
    %c0_i32 = arith.constant 0 : i32
    %c0_i32_0 = arith.constant 0 : i32
    return %arg0, %c0_i32 : i32, i32
  }
}

</mosaic_0001>

<bundles_post_ra>
// kernel: edge_loss.1
= control target key start
LH: loop header
LB: loop body
LE: loop exit
PB: predicated region body
PF: predicated region fallthrough
CT: control target
= control target key end

     0   :  { %s1238_s21 = smov 0   ;;  %s1399_s0 = inlined_call_operand.vmem [shape: bf16[320,32], index: 0, kind: input, shape index: {}]   ;;  %s1400_s1 = inlined_call_operand.vmem [shape: f32[160,16], index: 1, kind: input, shape index: {}]   ;;  %s1401_s2 = inlined_call_operand.vmem [shape: bf16[16,32], index: 2, kind: input, shape index: {}]   ;;  %s1402_s3 = inlined_call_operand.vmem [shape: bf16[32,16], index: 3, kind: input, shape index: {}]   ;;  %s1403_s4 = inlined_call_operand.vmem [shape: bf16[16,16], index: 4, kind: input, shape index: {}]   ;;  %s1404_s5 = inlined_call_operand.vmem [shape: bf16[16,16], index: 5, kind: input, shape index: {}]   ;;  %s1405_s6 = inlined_call_operand.vmem [shape: f32[16,128], index: 6, kind: output, shape index: {}]  }
   0x1 LB: > { %s1244_s22 = sadd.s32 4294967295, %s1201_s21   ;;  %p1047_p0 = scmp.ge.s32.totalorder %s1201_s21, 1  ;;  %s1201_s21 = sphi %s1238_s21, %s16_s21  }
   0x2   : > { %p224_p1 = scmp.lt.s32.totalorder %s1201_s21, 3 }
   0x4   : > { %p225_p2 = pnand %p1047_p0, %p224_p1 }
   0x5   : > { %s258_s25 = smul.u32 (!%p225_p2), 20, %s1244_s22  ;;  %p270_p7 = scmp.lt.s32.totalorder (!%p225_p2), %s1244_s22, 1 }
   0x6   : > { %228 = sbr.rel (%p225_p2) target bundleno = 1021 (0x3fd), region = 44 }
   0x7   : > { %p259_p3 = scmp.lt.s32.totalorder (!%p225_p2), %s258_s25, 39  ;;  %s264_s10 = smul.u32 (!%p225_p2), 10, %s1244_s22 }
   0x8   : > { %s457_s19 = smul.u32 (!%p225_p2), 5, %s1244_s22 }
   0x9   : > { %p265_p4 = scmp.lt.s32.totalorder (!%p225_p2), %s264_s10, 19 }
   0xa   : > { %p576_p5 = scmp.lt.s32.totalorder (!%p225_p2), %s457_s19, 10  ;;  %s674_s23 = sadd.s32 (!%p225_p2), 1, %s457_s19 }
   0xb   : > { %v1149_v0 = vld [vmem:[%s1402_s3 + $0x8] sm:$0xff]  ;;  %v1148_v1 = vld [vmem:[%s1402_s3] sm:$0xff]  ;;  %s1407_s25 = smov (!%p259_p3, %s258_s25), 39  ;;  %vm361_vm0 = vcmask 261120   ;;  %s1409_s10 = smov (!%p265_p4, %s264_s10), 19  ;;  %vm492_vm1 = vcmask 130048  }
   0xc   : > { %398 = vmatpush.bf16.msra.mxu0 %v1149_v0  ;;  %1154 = vmatpush.bf16.msra.mxu3 %v1149_v0  ;;  %s1048_s28 = sshll.u32 %s1407_s25, 2  ;;  %v1150_v18 = vld [vmem:[%s1401_s2] sm:$0xff]  ;;  %s1049_s11 = sshll.u32 %s1409_s10, 3 }
   0xd   : > { %1153 = vmatpush.bf16.msra.mxu2 %v1149_v0  ;;  %s262_s7 = scalar_lea.vmem %s1399_s0, %s1048_s28  ;;  %s1276_s14 = scalar_lea.vmem %s1400_s1, %s1049_s11  ;;  %v1289_v35 = vld [vmem:[%s1403_s4] sm:$0xff] }
   0xe   : > { %v1138_v2 = vld [vmem:[%s262_s7] sm:$0xff]  ;;  %v1139_v3 = vld [vmem:[%s262_s7 + $0x8] sm:$0xff]  ;;  %v1140_v4 = vld [vmem:[%s262_s7 + $0x10] sm:$0xff]  ;;  %p675_p6 = scmp.lt.s32.totalorder %s674_s23, 10  ;;  %s773_s24 = sadd.s32 2, %s457_s19 }
   0xf   : > { %v1141_v5 = vld [vmem:[%s262_s7 + $0x18] sm:$0xff]  ;;  %v1142_v6 = vld [vmem:[%s262_s7 + $0x20] sm:$0xff]  ;;  %v1143_v10 = vld [vmem:[%s262_s7 + $0x28] sm:$0xff]  ;;  %s872_s26 = sadd.s32 3, %s457_s19  ;;  %p774_p8 = scmp.lt.s32.totalorder %s773_s24, 10 }
  0x10   : > { %399 = vmatpush.bf16.msra.mxu0 %v1148_v1  ;;  %1156 = vmatpush.bf16.msra.mxu3 %v1148_v1  ;;  %v1146_v8 = vld [vmem:[%s262_s7 + $0x40] sm:$0xff]  ;;  %v1145_v9 = vld [vmem:[%s262_s7 + $0x38] sm:$0xff]  ;;  %v1147_v13 = vld [vmem:[%s262_s7 + $0x48] sm:$0xff]  ;;  %p873_p9 = scmp.lt.s32.totalorder %s872_s26, 10  ;;  %s1415_s22 = smov (!%p270_p7, %s1244_s22), 1 }
  0x11   : > { %1155 = vmatpush.bf16.msra.mxu2 %v1148_v1  ;;  %v1144_v14 = vld [vmem:[%s262_s7 + $0x30] sm:$0xff]  ;;  %v482_v27 = vld [vmem:[%s1276_s14] sm:$0xff]  ;;  %v483_v28 = vld [vmem:[%s1276_s14 + $0x8] sm:$0xff]  ;;  %s971_s29 = sadd.s32 4, %s457_s19  ;;  %s1050_s10 = sshll.u32 %s1415_s22, 3 }
  0x12   : > { %v1298_v50 = vld [vmem:[%s1404_s5] sm:$0xff]  ;;  %v595_v56 = vld [vmem:[%s1276_s14 + $0x10] sm:$0xff]  ;;  %v596_v57 = vld [vmem:[%s1276_s14 + $0x18] sm:$0xff]  ;;  %p972_p10 = scmp.lt.s32.totalorder %s971_s29, 10 }
  0x13   : > { %1099 = vmatmul.msk.bf16.vlgmr.msra.gmra.mxu0 %vm361_vm0, %v1138_v2  ;;  %1107 = vmatmul.msk.bf16.vlgmr.msra.gmra.mxu3 %vm361_vm0, %v1146_v8  ;;  %v694_v63 = vld [vmem:[%s1276_s14 + $0x20] sm:$0xff]  ;;  %v695_v0 = vld [vmem:[%s1276_s14 + $0x28] sm:$0xff] }
  0x14   : > { %1106 = vmatmul.msk.bf16.vlgmr.msra.gmra.mxu2 %vm361_vm0, %v1145_v9  ;;  %527 = vmatpush.bf16.msrb.mxu3 %v1298_v50 }
  0x23   : > { %1100 = vmatmul.msk.bf16.gmra.mxu0 %vm361_vm0, %v1139_v3  ;;  %1108 = vmatmul.msk.bf16.gmra.mxu3 %vm361_vm0, %v1147_v13  ;;  %v892_v13 = vld [vmem:[%s1276_s14 + $0x40] sm:$0xff] }
  0x33   : > { %1101 = vmatmul.msk.bf16.gmra.mxu0 %vm361_vm0, %v1140_v4 }
  0x43   : > { %1102 = vmatmul.msk.bf16.gmra.mxu0 %vm361_vm0, %v1141_v5 }
  0x53   : > { %1103 = vmatmul.msk.bf16.gmra.mxu0 %vm361_vm0, %v1142_v6  ;;  %v793_v6 = vld [vmem:[%s1276_s14 + $0x30] sm:$0xff] }
  0x63   : > { %1104 = vmatmul.msk.bf16.gmra.mxu0 %vm361_vm0, %v1143_v10 }
  0x73   : > { %1105 = vmatmul.msk.bf16.gmra.mxu0 %vm361_vm0, %v1144_v14  ;;  %v893_v14 = vld [vmem:[%s1276_s14 + $0x48] sm:$0xff] }
  0x90   : > { %v401_v7 = vpop.f32.mrf.mxu0 }
  0x96   : > { %v441_v36 = vpop.f32.mrf.mxu3 }
  0x97   : > { %v436_v39 = vpop.f32.mrf.mxu2 }
  0x98   : > { %v403_v11 = vpop.f32.mrf.mxu0 }
  0x99   : > { %v458_v17 = vpack.c.bf16 %v403_v11, %v401_v7  ;;  %v794_v7 = vld [vmem:[%s1276_s14 + $0x38] sm:$0xff]  ;;  %s273_s14 = scalar_lea.vmem %s1405_s6, %s1050_s10 }
  0x9e   : > { %v443_v42 = vpop.f32.mrf.mxu3 }
  0x9f   : > { %v438_v43 = vpop.f32.mrf.mxu2  ;;  %v876_v51 = vpack.c.bf16 %v443_v42, %v441_v36 }
  0xa0   : > { %v406_v12 = vpop.f32.mrf.mxu0  ;;  %v778_v44 = vpack.c.bf16 %v438_v43, %v436_v39 }
  0xa6   : > { %v446_v46 = vpop.f32.mrf.mxu3 }
  0xa8   : > { %v408_v15 = vpop.f32.mrf.mxu0 }
  0xa9   : > { %v459_v16 = vpack.c.bf16 %v408_v15, %v406_v12 }
  0xab   : > { %474 = vmatpush.bf16.msra.mxu1 %v459_v16 }
  0xae   : > { %v448_v48 = vpop.f32.mrf.mxu3 }
  0xaf   : > { %475 = vmatpush.bf16.msra.mxu1 %v458_v17  ;;  %v877_v49 = vpack.c.bf16 %v448_v48, %v446_v46 }
  0xb0   : > { %v411_v19 = vpop.f32.mrf.mxu0 }
  0xb2   : > { %1113 = vmatmul.msk.bf16.vlgmr.msra.gmra.mxu1 %vm361_vm0, %v1150_v18 }
  0xb3   : > { %625 = vmatpush.bf16.msrb.mxu1 %v1298_v50 }
  0xb7   : > { %724 = vmatpush.bf16.msra.mxu1 %v1298_v50 }
  0xb8   : > { %v413_v20 = vpop.f32.mrf.mxu0 }
  0xb9   : > { %v579_v38 = vpack.c.bf16 %v413_v20, %v411_v19 }
  0xc0   : > { %v416_v21 = vpop.f32.mrf.mxu0 }
  0xc8   : > { %v418_v22 = vpop.f32.mrf.mxu0 }
  0xc9   : > { %v580_v33 = vpack.c.bf16 %v418_v22, %v416_v21 }
  0xd0   : > { %v421_v23 = vpop.f32.mrf.mxu0 }
  0xd8   : > { %v423_v24 = vpop.f32.mrf.mxu0 }
  0xd9   : > { %v678_v41 = vpack.c.bf16 %v423_v24, %v421_v23 }
  0xe0   : > { %v426_v26 = vpop.f32.mrf.mxu0 }
  0xe8   : > { %v428_v34 = vpop.f32.mrf.mxu0 }
  0xe9   : > { %v679_v37 = vpack.c.bf16 %v428_v34, %v426_v26 }
  0xf0   : > { %v431_v40 = vpop.f32.mrf.mxu0 }
  0xf8   : > { %v433_v45 = vpop.f32.mrf.mxu0 }
  0xf9   : > { %v777_v47 = vpack.c.bf16 %v433_v45, %v431_v40 }
 0x12f   : > { %v477_v25 = vpop.f32.mrf.mxu1 }
 0x130   : > { %v1280_v30 = vsub.f32 %v477_v25, %v482_v27 }
 0x137   : > { %v479_v29 = vpop.f32.mrf.mxu1 }
 0x138   : > { %v1282_v31 = vsub.f32 %v479_v29, %v483_v28 }
 0x13a   : > { %v486_v32 = vpack.c.bf16 %v1282_v31, %v1280_v30 }
 0x13c   : > { %503 = vmatpush.bf16.msrb.mxu2 %v486_v32 }
 0x13f   : > { %1118 = vmatmul.msk.bf16.vlgmr.msrb.gmra.mxu2 %vm492_vm1, %v1289_v35 }
 0x140   : > { %587 = vmatpush.bf16.msra.mxu2 %v580_v33 }
 0x144   : > { %588 = vmatpush.bf16.msra.mxu2 %v579_v38 }
 0x148   : > { %686 = vmatpush.bf16.msrb.mxu2 %v679_v37 }
 0x14c   : > { %687 = vmatpush.bf16.msrb.mxu2 %v678_v41 }
 0x14f   : > { %1124 = vmatmul.msk.bf16.vlgmr.msra.gmra.mxu2 %vm361_vm0, %v1150_v18 }
 0x150   : > { %785 = vmatpush.bf16.msra.mxu2 %v778_v44 }
 0x154   : > { %786 = vmatpush.bf16.msra.mxu2 %v777_v47 }
 0x15f   : > { %1127 = vmatmul.msk.bf16.vlgmr.msrb.gmra.mxu2 %vm361_vm0, %v1150_v18 }
 0x160   : > { %884 = vmatpush.bf16.msrb.mxu2 %v877_v49 }
 0x164   : > { %885 = vmatpush.bf16.msrb.mxu2 %v876_v51 }
 0x16f   : > { %1130 = vmatmul.msk.bf16.vlgmr.msra.gmra.mxu2 %vm361_vm0, %v1150_v18 }
 0x17f   : > { %1133 = vmatmul.msk.bf16.vlgmr.msrb.gmra.mxu2 %vm361_vm0, %v1150_v18 }
 0x1c2   : > { %v505_v52 = vpop.f32.mrf.mxu2 }
 0x1ca   : > { %v507_v53 = vpop.f32.mrf.mxu2 }
 0x1cb   : > { %v510_v54 = vpack.c.bf16 %v507_v53, %v505_v52 }
 0x1cd   : > { %1123 = vmatmul.msk.bf16.vlgmr.msrb.gmra.mxu3 %vm492_vm1, %v510_v54 }
 0x1d2   : > { %v590_v55 = vpop.f32.mrf.mxu2 }
 0x1d3   : > { %v1308_v59 = vsub.f32 %v590_v55, %v595_v56 }
 0x1da   : > { %v592_v58 = vpop.f32.mrf.mxu2 }
 0x1db   : > { %v1310_v60 = vsub.f32 %v592_v58, %v596_v57 }
 0x1dd   : > { %v599_v61 = vpack.c.bf16 %v1310_v60, %v1308_v59 }
 0x1df   : > { %607 = vmatpush.bf16.msra.mxu3 %v599_v61 }
 0x1e2   : > { %1125 = vmatmul.msk.bf16.vlgmr.msra.gmra.mxu3 %vm492_vm1, %v1289_v35  ;;  %v689_v62 = vpop.f32.mrf.mxu2 }
 0x1e3   : > { %v1318_v2 = vsub.f32 %v689_v62, %v694_v63 }
 0x1ea   : > { %v691_v1 = vpop.f32.mrf.mxu2 }
 0x1eb   : > { %v1320_v3 = vsub.f32 %v691_v1, %v695_v0 }
 0x1ed   : > { %v698_v4 = vpack.c.bf16 %v1320_v3, %v1318_v2 }
 0x1ef   : > { %706 = vmatpush.bf16.msrb.mxu3 %v698_v4 }
 0x1f2   : > { %1128 = vmatmul.msk.bf16.vlgmr.msrb.gmra.mxu3 %vm492_vm1, %v1289_v35  ;;  %v788_v5 = vpop.f32.mrf.mxu2 }
 0x1f3   : > { %v1328_v9 = vsub.f32 %v788_v5, %v793_v6 }
 0x1fa   : > { %v790_v8 = vpop.f32.mrf.mxu2 }
 0x1fb   : > { %v1330_v10 = vsub.f32 %v790_v8, %v794_v7 }
 0x1fd   : > { %v797_v11 = vpack.c.bf16 %v1330_v10, %v1328_v9 }
 0x1ff   : > { %805 = vmatpush.bf16.msra.mxu3 %v797_v11 }
 0x202   : > { %1131 = vmatmul.msk.bf16.vlgmr.msra.gmra.mxu3 %vm492_vm1, %v1289_v35  ;;  %v887_v12 = vpop.f32.mrf.mxu2 }
 0x203   : > { %v1338_v16 = vsub.f32 %v887_v12, %v892_v13 }
 0x20a   : > { %v889_v15 = vpop.f32.mrf.mxu2 }
 0x20b   : > { %v1340_v17 = vsub.f32 %v889_v15, %v893_v14 }
 0x20d   : > { %v896_v18 = vpack.c.bf16 %v1340_v17, %v1338_v16 }
 0x20f   : > { %904 = vmatpush.bf16.msrb.mxu3 %v896_v18 }
 0x212   : > { %1134 = vmatmul.msk.bf16.vlgmr.msrb.gmra.mxu3 %vm492_vm1, %v1289_v35 }
 0x250   : > { %v529_v19 = vpop.f32.mrf.mxu3 }
 0x251   : > { %v534_v20 = vsub.f32 %v1280_v30, %v529_v19 }
 0x253   : > { %v536_v21 = vmul.f32 %v534_v20, %v534_v20 }
 0x255   : > { %v538_v22 = vadd.f32 1e-08, %v536_v21 }
 0x257   : > { %1175 = vrsqrt.f32 %v538_v22  ;;  %vm547_vm2 = vcmp.eq.f32.partialorder %v538_v22, inf  ;;  %v550_v44 = vand.u32 2147483648, %v538_v22  ;;  %vm549_vm3 = vcmp.eq.f32.partialorder %v538_v22, 0.0 }
 0x258   : > { %v531_v23 = vpop.f32.mrf.mxu3 }
 0x259   : > { %v535_v24 = vsub.f32 %v1282_v31, %v531_v23 }
 0x25b   : > { %v537_v25 = vmul.f32 %v535_v24, %v535_v24 }
 0x25d   : > { %v1176_v26 = vpop.eup %1175  ;;  %v539_v27 = vadd.f32 1e-08, %v537_v25 }
 0x25e   : > { %v541_v28 = vmul.f32 %v1176_v26, %v538_v22 }
 0x25f   : > { %1177 = vrsqrt.f32 %v539_v27  ;;  %vm559_vm4 = vcmp.eq.f32.partialorder %v539_v27, inf  ;;  %v562_v47 = vand.u32 2147483648, %v539_v27  ;;  %vm561_vm5 = vcmp.eq.f32.partialorder %v539_v27, 0.0 }
 0x260   : > { %v542_v29 = vmul.f32 %v1176_v26, %v541_v28 }
 0x262   : > { %v543_v32 = vmul.f32 0.5, %v542_v29 }
 0x264   : > { %v544_v33 = vsub.f32 1.5, %v543_v32 }
 0x265   : > { %v1178_v34 = vpop.eup %1177  ;;  %v609_v36 = vpop.f32.mrf.mxu3 }
 0x266   : > { %v545_v35 = vmul.f32 %v1176_v26, %v544_v33  ;;  %v553_v37 = vmul.f32 %v1178_v34, %v539_v27 }
 0x268   : > { %v554_v38 = vmul.f32 %v1178_v34, %v553_v37  ;;  %v546_v30 = vmul.f32 %v545_v35, %v538_v22 }
 0x26a   : > { %v555_v39 = vmul.f32 0.5, %v554_v38  ;;  %v548_v31 = vsel %vm547_vm2, %v538_v22, %v546_v30 }
 0x26b   : > { %v551_v46 = vsel %vm549_vm3, %v550_v44, %v548_v31 }
 0x26c   : > { %v556_v40 = vsub.f32 1.5, %v555_v39  ;;  %v564_v51 = vsel %vm492_vm1, %v551_v46, 0.0 }
 0x26d   : > { %v611_v41 = vpop.f32.mrf.mxu3 }
 0x26e   : > { %v614_v42 = vpack.c.bf16 %v611_v41, %v609_v36  ;;  %v557_v43 = vmul.f32 %v1178_v34, %v556_v40 }
 0x270   : > { %1126 = vmatmul.msk.bf16.vlgmr.msrb.gmra.mxu1 %vm492_vm1, %v614_v42  ;;  %v558_v45 = vmul.f32 %v557_v43, %v539_v27 }
 0x271   : > { %823 = vmatpush.bf16.msrb.mxu1 %v1298_v50 }
 0x272   : > { %v560_v48 = vsel %vm559_vm4, %v539_v27, %v558_v45 }
 0x273   : > { %v563_v49 = vsel %vm561_vm5, %v562_v47, %v560_v48 }
 0x274   : > { %v565_v52 = vsel %vm492_vm1, %v563_v49, 0.0 }
 0x275   : > { %v708_v53 = vpop.f32.mrf.mxu3  ;;  %v566_v54 = vadd.f32 %v565_v52, %v564_v51 }
 0x277   : > { %567 = vadd.xlane.f32.xlu0 %v566_v54 }
 0x27d   : > { %v710_v55 = vpop.f32.mrf.mxu3 }
 0x27e   : > { %v713_v56 = vpack.c.bf16 %v710_v55, %v708_v53 }
 0x280   : > { %1129 = vmatmul.msk.bf16.vlgmr.msra.gmra.mxu1 %vm492_vm1, %v713_v56 }
 0x281   : > { %922 = vmatpush.bf16.msra.mxu1 %v1298_v50 }
 0x285   : > { %v807_v57 = vpop.f32.mrf.mxu3 }
 0x28d   : > { %v809_v58 = vpop.f32.mrf.mxu3 }
 0x28e   : > { %v812_v61 = vpack.c.bf16 %v809_v58, %v807_v57 }
 0x290   : > { %1132 = vmatmul.msk.bf16.vlgmr.msrb.gmra.mxu1 %vm492_vm1, %v812_v61 }
 0x295   : > { %v906_v62 = vpop.f32.mrf.mxu3 }
 0x29d   : > { %v908_v63 = vpop.f32.mrf.mxu3 }
 0x29e   : > { %v911_v0 = vpack.c.bf16 %v908_v63, %v906_v62 }
 0x2a0   : > { %1135 = vmatmul.msk.bf16.vlgmr.msra.gmra.mxu1 %vm492_vm1, %v911_v0 }
 0x2ea   : > { %v568_v1 = vpop.xlane.xlu0 %567 }
 0x2eb   : > { %v569_v4 = vrot.slane %v568_v1, 4 }
 0x2ed   : > { %v570_v5 = vadd.f32 %v569_v4, %v568_v1  ;;  %v627_v6 = vpop.f32.mrf.mxu1 }
 0x2ee   : > { %v632_v7 = vsub.f32 %v1308_v59, %v627_v6 }
 0x2ef   : > { %v571_v8 = vrot.slane %v570_v5, 2 }
 0x2f0   : > { %v634_v11 = vmul.f32 %v632_v7, %v632_v7 }
 0x2f1   : > { %v572_v12 = vadd.f32 %v571_v8, %v570_v5 }
 0x2f2   : > { %v636_v50 = vadd.f32 1e-08, %v634_v11 }
 0x2f3   : > { %v573_v13 = vrot.slane %v572_v12, 1 }
 0x2f4   : > { %1179 = vrsqrt.f32 %v636_v50  ;;  %vm645_vm6 = vcmp.eq.f32.partialorder %v636_v50, inf  ;;  %v648_v31 = vand.u32 2147483648, %v636_v50  ;;  %vm647_vm7 = vcmp.eq.f32.partialorder %v636_v50, 0.0 }
 0x2f5   : > { %v629_v14 = vpop.f32.mrf.mxu1  ;;  %v574_v15 = vadd.f32 %v573_v13, %v572_v12 }
 0x2f6   : > { %v633_v18 = vsub.f32 %v1310_v60, %v629_v14 }
 0x2f7   : > { %1157 = vpush %v574_v15 }
 0x2f8   : > { %v635_v19 = vmul.f32 %v633_v18, %v633_v18 }
 0x2fa   : > { %v1180_v20 = vpop.eup %1179  ;;  %v637_v21 = vadd.f32 1e-08, %v635_v19 }
 0x2fb   : > { %v639_v22 = vmul.f32 %v1180_v20, %v636_v50 }
 0x2fc   : > { %1181 = vrsqrt.f32 %v637_v21  ;;  %vm657_vm8 = vcmp.eq.f32.partialorder %v637_v21, inf  ;;  %v660_v47 = vand.u32 2147483648, %v637_v21  ;;  %vm659_vm9 = vcmp.eq.f32.partialorder %v637_v21, 0.0 }
 0x2fd   : > { %v726_v23 = vpop.f32.mrf.mxu1  ;;  %v640_v24 = vmul.f32 %v1180_v20, %v639_v22 }
 0x2fe   : > { %v731_v59 = vsub.f32 %v1318_v2, %v726_v23 }
 0x2ff   : > { %v641_v25 = vmul.f32 0.5, %v640_v24 }
 0x300   : > { %v733_v26 = vmul.f32 %v731_v59, %v731_v59 }
 0x301   : > { %v642_v27 = vsub.f32 1.5, %v641_v25 }
 0x302   : > { %v1182_v28 = vpop.eup %1181  ;;  %v1359_v29 = vadd.f32 1e-08, %v733_v26 }
 0x303   : > { %v643_v32 = vmul.f32 %v1180_v20, %v642_v27  ;;  %v651_v33 = vmul.f32 %v1182_v28, %v637_v21 }
 0x304   : > { %1183 = vrsqrt.f32 %v1359_v29  ;;  %vm744_vm10 = vcmp.eq.f32.partialorder %v1359_v29, inf  ;;  %v747_v13 = vand.u32 2147483648, %v1359_v29  ;;  %vm746_vm11 = vcmp.eq.f32.partialorder %v1359_v29, 0.0 }
 0x305   : > { %v728_v60 = vpop.f32.mrf.mxu1  ;;  %v652_v34 = vmul.f32 %v1182_v28, %v651_v33  ;;  %v644_v35 = vmul.f32 %v643_v32, %v636_v50 }
 0x306   : > { %v732_v36 = vsub.f32 %v1320_v3, %v728_v60 }
 0x307   : > { %v653_v37 = vmul.f32 0.5, %v652_v34  ;;  %v646_v40 = vsel %vm645_vm6, %v636_v50, %v644_v35 }
 0x308   : > { %v734_v38 = vmul.f32 %v732_v36, %v732_v36  ;;  %v649_v3 = vsel %vm647_vm7, %v648_v31, %v646_v40 }
 0x309   : > { %v654_v30 = vsub.f32 1.5, %v653_v37  ;;  %v662_v53 = vsel %vm492_vm1, %v649_v3, 0.0 }
 0x30a   : > { %v1184_v39 = vpop.eup %1183  ;;  %v736_v2 = vadd.f32 1e-08, %v734_v38 }
 0x30b   : > { %v655_v41 = vmul.f32 %v1182_v28, %v654_v30  ;;  %v738_v42 = vmul.f32 %v1184_v39, %v1359_v29 }
 0x30c   : > { %1185 = vrsqrt.f32 %v736_v2  ;;  %vm756_vm12 = vcmp.eq.f32.partialorder %v736_v2, inf  ;;  %v759_v20 = vand.u32 2147483648, %v736_v2  ;;  %vm758_vm13 = vcmp.eq.f32.partialorder %v736_v2, 0.0 }
 0x30d   : > { %v825_v43 = vpop.f32.mrf.mxu1  ;;  %v656_v44 = vmul.f32 %v655_v41, %v637_v21  ;;  %v739_v45 = vmul.f32 %v1184_v39, %v738_v42 }
 0x30e   : > { %v830_v46 = vsub.f32 %v1328_v9, %v825_v43 }
 0x30f   : > { %v658_v48 = vsel %vm657_vm8, %v637_v21, %v656_v44  ;;  %v740_v49 = vmul.f32 0.5, %v739_v45 }
 0x310   : > { %v832_v51 = vmul.f32 %v830_v46, %v830_v46  ;;  %v661_v52 = vsel %vm659_vm9, %v660_v47, %v658_v48 }
 0x311   : > { %v663_v54 = vsel %vm492_vm1, %v661_v52, 0.0  ;;  %v741_v55 = vsub.f32 1.5, %v740_v49 }
 0x312   : > { %v1186_v56 = vpop.eup %1185  ;;  %v1367_v57 = vadd.f32 1e-08, %v832_v51  ;;  %v664_v58 = vadd.f32 %v663_v54, %v662_v53 }
 0x313   : > { %v742_v61 = vmul.f32 %v1184_v39, %v741_v55  ;;  %v750_v62 = vmul.f32 %v1186_v56, %v736_v2 }
 0x314   : > { %1187 = vrsqrt.f32 %v1367_v57  ;;  %665 = vadd.xlane.f32.xlu0 %v664_v58  ;;  %vm843_vm14 = vcmp.eq.f32.partialorder %v1367_v57, inf  ;;  %v846_v42 = vand.u32 2147483648, %v1367_v57  ;;  %vm845_vm15 = vcmp.eq.f32.partialorder %v1367_v57, 0.0 }
 0x315   : > { %v827_v9 = vpop.f32.mrf.mxu1  ;;  %v751_v63 = vmul.f32 %v1186_v56, %v750_v62  ;;  %v743_v1 = vmul.f32 %v742_v61, %v1359_v29 }
 0x316   : > { %v831_v0 = vsub.f32 %v1330_v10, %v827_v9 }
 0x317   : > { %v752_v4 = vmul.f32 0.5, %v751_v63  ;;  %v745_v11 = vsel %vm744_vm10, %v1359_v29, %v743_v1 }
 0x318   : > { %v833_v5 = vmul.f32 %v831_v0, %v831_v0  ;;  %v748_v19 = vsel %vm746_vm11, %v747_v13, %v745_v11 }
 0x319   : > { %v753_v6 = vsub.f32 1.5, %v752_v4  ;;  %v761_v59 = vsel %vm492_vm1, %v748_v19, 0.0 }
 0x31a   : > { %v1188_v7 = vpop.eup %1187  ;;  %v835_v8 = vadd.f32 1e-08, %v833_v5 }
 0x31b   : > { %v754_v12 = vmul.f32 %v1186_v56, %v753_v6  ;;  %v837_v50 = vmul.f32 %v1188_v7, %v1367_v57 }
 0x31c   : > { %1189 = vrsqrt.f32 %v835_v8  ;;  %vm855_vm0 = vcmp.eq.f32.partialorder %v835_v8, inf  ;;  %v858_v44 = vand.u32 2147483648, %v835_v8  ;;  %vm857_vm2 = vcmp.eq.f32.partialorder %v835_v8, 0.0 }
 0x31d   : > { %v924_v14 = vpop.f32.mrf.mxu1  ;;  %v755_v10 = vmul.f32 %v754_v12, %v736_v2  ;;  %v838_v15 = vmul.f32 %v1188_v7, %v837_v50 }
 0x31e   : > { %v929_v18 = vsub.f32 %v1338_v16, %v924_v14 }
 0x31f   : > { %v757_v21 = vsel %vm756_vm12, %v736_v2, %v755_v10  ;;  %v839_v22 = vmul.f32 0.5, %v838_v15 }
 0x320   : > { %v931_v23 = vmul.f32 %v929_v18, %v929_v18  ;;  %v760_v24 = vsel %vm758_vm13, %v759_v20, %v757_v21 }
 0x321   : > { %v762_v25 = vsel %vm492_vm1, %v760_v24, 0.0  ;;  %v840_v26 = vsub.f32 1.5, %v839_v22 }
 0x322   : > { %v1190_v27 = vpop.eup %1189  ;;  %v933_v28 = vadd.f32 1e-08, %v931_v23  ;;  %v763_v29 = vadd.f32 %v762_v25, %v761_v59 }
 0x323   : > { %v841_v32 = vmul.f32 %v1188_v7, %v840_v26  ;;  %v849_v33 = vmul.f32 %v1190_v27, %v835_v8 }
 0x324   : > { %1191 = vrsqrt.f32 %v933_v28  ;;  %764 = vadd.xlane.f32.xlu1 %v763_v29  ;;  %vm942_vm3 = vcmp.eq.f32.partialorder %v933_v28, inf  ;;  %v945_v9 = vand.u32 2147483648, %v933_v28  ;;  %vm944_vm4 = vcmp.eq.f32.partialorder %v933_v28, 0.0 }
 0x325   : > { %v926_v16 = vpop.f32.mrf.mxu1  ;;  %v850_v60 = vmul.f32 %v1190_v27, %v849_v33  ;;  %v842_v36 = vmul.f32 %v841_v32, %v1367_v57 }
 0x326   : > { %v930_v34 = vsub.f32 %v1340_v17, %v926_v16 }
 0x327   : > { %v851_v35 = vmul.f32 0.5, %v850_v60  ;;  %v844_v2 = vsel %vm843_vm14, %v1367_v57, %v842_v36 }
 0x328   : > { %v932_v37 = vmul.f32 %v930_v34, %v930_v34  ;;  %v847_v43 = vsel %vm845_vm15, %v846_v42, %v844_v2  ;;  %s1158_s20 = spop %1157 }
 0x329   : > { %v852_v38 = vsub.f32 1.5, %v851_v35  ;;  %v860_v47 = vsel %vm492_vm1, %v847_v43, 0.0  ;;  %s1411_s20 = smov (!%p576_p5, %s1158_s20), 0.0 }
 0x32a   : > { %v1192_v30 = vpop.eup %1191  ;;  %v934_v39 = vadd.f32 1e-08, %v932_v37 }
 0x32b   : > { %v853_v40 = vmul.f32 %v1190_v27, %v852_v38  ;;  %v936_v41 = vmul.f32 %v1192_v30, %v933_v28 }
 0x32c   : > { %1193 = vrsqrt.f32 %v934_v39  ;;  %vm954_vm5 = vcmp.eq.f32.partialorder %v934_v39, inf  ;;  %v957_v1 = vand.u32 2147483648, %v934_v39  ;;  %vm956_vm6 = vcmp.eq.f32.partialorder %v934_v39, 0.0 }
 0x32d   : > { %v854_v31 = vmul.f32 %v853_v40, %v835_v8  ;;  %v937_v17 = vmul.f32 %v1192_v30, %v936_v41 }
 0x32f   : > { %v856_v45 = vsel %vm855_vm0, %v835_v8, %v854_v31  ;;  %v938_v46 = vmul.f32 0.5, %v937_v17 }
 0x330   : > { %v859_v3 = vsel %vm857_vm2, %v858_v44, %v856_v45 }
 0x331   : > { %v861_v48 = vsel %vm492_vm1, %v859_v3, 0.0  ;;  %v939_v49 = vsub.f32 1.5, %v938_v46 }
 0x332   : > { %v1194_v51 = vpop.eup %1193  ;;  %v862_v52 = vadd.f32 %v861_v48, %v860_v47 }
 0x333   : > { %v940_v53 = vmul.f32 %v1192_v30, %v939_v49  ;;  %v948_v54 = vmul.f32 %v1194_v51, %v934_v39 }
 0x334   : > { %863 = vadd.xlane.f32.xlu1 %v862_v52 }
 0x335   : > { %v949_v55 = vmul.f32 %v1194_v51, %v948_v54  ;;  %v941_v56 = vmul.f32 %v940_v53, %v933_v28 }
 0x337   : > { %v950_v57 = vmul.f32 0.5, %v949_v55  ;;  %v943_v61 = vsel %vm942_vm3, %v933_v28, %v941_v56 }
 0x338   : > { %v946_v0 = vsel %vm944_vm4, %v945_v9, %v943_v61 }
 0x339   : > { %v951_v58 = vsub.f32 1.5, %v950_v57  ;;  %v959_v6 = vsel %vm492_vm1, %v946_v0, 0.0 }
 0x33b   : > { %v952_v62 = vmul.f32 %v1194_v51, %v951_v58 }
 0x33d   : > { %v953_v63 = vmul.f32 %v952_v62, %v934_v39 }
 0x33f   : > { %v955_v4 = vsel %vm954_vm5, %v934_v39, %v953_v63 }
 0x340   : > { %v958_v5 = vsel %vm956_vm6, %v957_v1, %v955_v4 }
 0x341   : > { %v960_v7 = vsel %vm492_vm1, %v958_v5, 0.0 }
 0x342   : > { %v961_v8 = vadd.f32 %v960_v7, %v959_v6 }
 0x344   : > { %962 = vadd.xlane.f32.xlu2 %v961_v8 }
 0x387   : > { %v666_v11 = vpop.xlane.xlu0 %665 }
 0x388   : > { %v667_v12 = vrot.slane %v666_v11, 4 }
 0x38a   : > { %v668_v50 = vadd.f32 %v667_v12, %v666_v11 }
 0x38c   : > { %v669_v13 = vrot.slane %v668_v50, 2 }
 0x38e   : > { %v670_v14 = vadd.f32 %v669_v13, %v668_v50 }
 0x390   : > { %v671_v10 = vrot.slane %v670_v14, 1 }
 0x392   : > { %v672_v15 = vadd.f32 %v671_v10, %v670_v14 }
 0x394   : > { %1159 = vpush %v672_v15 }
 0x397   : > { %v765_v18 = vpop.xlane.xlu1 %764 }
 0x398   : > { %v766_v19 = vrot.slane %v765_v18, 4 }
 0x39a   : > { %v767_v20 = vadd.f32 %v766_v19, %v765_v18 }
 0x39c   : > { %v768_v21 = vrot.slane %v767_v20, 2 }
 0x39e   : > { %v769_v22 = vadd.f32 %v768_v21, %v767_v20 }
 0x3a0   : > { %v770_v23 = vrot.slane %v769_v22, 1 }
 0x3a2   : > { %v771_v24 = vadd.f32 %v770_v23, %v769_v22 }
 0x3a4   : > { %1161 = vpush %v771_v24 }
 0x3a7   : > { %v864_v59 = vpop.xlane.xlu1 %863 }
 0x3a8   : > { %v865_v25 = vrot.slane %v864_v59, 4 }
 0x3aa   : > { %v866_v26 = vadd.f32 %v865_v25, %v864_v59 }
 0x3ac   : > { %v867_v27 = vrot.slane %v866_v26, 2 }
 0x3ae   : > { %v868_v28 = vadd.f32 %v867_v27, %v866_v26 }
 0x3b0   : > { %v869_v29 = vrot.slane %v868_v28, 1 }
 0x3b2   : > { %v870_v32 = vadd.f32 %v869_v29, %v868_v28 }
 0x3b4   : > { %1163 = vpush %v870_v32 }
 0x3b7   : > { %v963_v33 = vpop.xlane.xlu2 %962 }
 0x3b8   : > { %v964_v16 = vrot.slane %v963_v33, 4 }
 0x3ba   : > { %v965_v60 = vadd.f32 %v964_v16, %v963_v33 }
 0x3bc   : > { %v966_v34 = vrot.slane %v965_v60, 2 }
 0x3be   : > { %v967_v36 = vadd.f32 %v966_v34, %v965_v60 }
 0x3c0   : > { %v968_v35 = vrot.slane %v967_v36, 1 }
 0x3c2   : > { %v969_v37 = vadd.f32 %v968_v35, %v967_v36 }
 0x3c4   : > { %1165 = vpush %v969_v37 }
 0x3c5   : > { %s1160_s25 = spop %1159 }
 0x3c6   : > { %s1413_s25 = smov (!%p675_p6, %s1160_s25), 0.0 }
 0x3c7   : > { %s677_s30 = sadd.f32 %s1413_s25, %s1411_s20 }
 0x3d5   : > { %s1162_s27 = spop %1161 }
 0x3d6   : > { %s1417_s27 = smov (!%p774_p8, %s1162_s27), 0.0 }
 0x3d7   : > { %s776_s7 = sadd.f32 %s1417_s27, %s677_s30 }
 0x3e5   : > { %s1164_s28 = spop %1163 }
 0x3e6   : > { %s1419_s28 = smov (!%p873_p9, %s1164_s28), 0.0 }
 0x3e7   : > { %s875_s8 = sadd.f32 %s1419_s28, %s776_s7 }
 0x3f5   : > { %s1166_s9 = spop %1165 }
 0x3f6   : > { %s1421_s9 = smov (!%p972_p10, %s1166_s9), 0.0 }
 0x3f7   : > { %s974_s11 = sadd.f32 %s1421_s9, %s875_s8 }
 0x3f9   : > { %s975_s15 = smul.f32 0.0009765625, %s974_s11 }
 0x3fb   : > { %v976_v38 = vstv %s975_s15 }
 0x3fc   : > { %977 = vst [vmem:[%s273_s14] sm:$0xff] %v976_v38 }
 0x3fd PF: > { %s16_s21 = sadd.s32 1, %s1201_s21  }
 0x3fe   : > { %p13_p11 = scmp.ge.s32.totalorder %s16_s21, 4  }
 0x400   :  { %15 = sbr.rel (!%p13_p11) target bundleno = 1 (0x1), region = 77 }

</bundles_post_ra>
